<compile_context>
chip_gen: v7x
topology: tpu7x:2x2x1
jax: 0.10.0
libtpu: 0.0.40
codegen_flags: <defaults>
</compile_context>

<pallas_src>
import functools

import jax
import jax.numpy as jnp
from jax import lax
from jax.experimental import pallas as pl
from jax.experimental.pallas import tpu as pltpu


def _round_up(x, m):
    return ((x + m - 1) // m) * m


def _resident_spec(block_shape):
    """BlockSpec for a grid-invariant (VMEM-resident) operand.

    Constant index_map => the block never changes; request a single buffer so
    the resident weight isn't double-buffered for nothing.  Falls back to a
    plain spec if this jax build lacks pipeline_mode / pl.Buffered.
    """
    idx = lambda i: (0, 0)
    try:
        return pl.BlockSpec(block_shape, idx, pipeline_mode=pl.Buffered(1))
    except (TypeError, AttributeError):
        return pl.BlockSpec(block_shape, idx)


# --------------------------------------------------------------------------
# Kernels
# --------------------------------------------------------------------------
def _latent_train_kernel(h_ref, w_ref, b_ref, eps_ref, z_ref, kl_ref, *,
                         lp, tile_b, true_batch):
    i = pl.program_id(0)

    # One fused MXU matmul: columns [0, lp) -> mu, [lp, 2*lp) -> log_var.
    # Both halves start on a vreg (128-lane) boundary, so the slices are views.
    proj = jnp.dot(h_ref[...], w_ref[...],
                   preferred_element_type=jnp.float32) + b_ref[...]
    mu = proj[:, :lp]
    log_var = proj[:, lp:]

    # One EUP transcendental; exp(log_var) == sigma * sigma (free VALU slot).
    sigma = jnp.exp(0.5 * log_var)

    # Lane-dense z store at width lp (no concatenate, no masked vst).
    z = mu + sigma * eps_ref[...]
    z_ref[...] = z.astype(z_ref.dtype)

    # Per-block KL partial: row-sum only (axis=0), lane-dense (1, lp) store.
    # Zero-padded weight/bias columns give mu = log_var = 0 -> term
    # 1 + 0 - 0 - exp(0) = 0, so no column masking is needed.
    kl_terms = 1.0 + log_var - mu * mu - sigma * sigma
    if true_batch % tile_b != 0:
        rows = i * tile_b + lax.broadcasted_iota(jnp.int32, (tile_b, 1), 0)
        kl_terms = jnp.where(rows < true_batch, kl_terms, 0.0)
    kl_ref[...] = jnp.sum(kl_terms, axis=0, keepdims=True)


def _latent_eval_kernel(h_ref, w_ref, b_ref, z_ref):
    # Eval path: z = mu only.  Only the mu half of the fused weight is passed,
    # so there is no wasted MXU work / weight DMA / z writeback.
    z_ref[...] = (jnp.dot(h_ref[...], w_ref[...],
                          preferred_element_type=jnp.float32)
                  + b_ref[...]).astype(z_ref.dtype)


# --------------------------------------------------------------------------
# Parameter fusion / wrappers
# --------------------------------------------------------------------------
def fuse_latent_params(params):
    """Fuse mu/logvar projections into one lane-aligned (n_hidden, 2*Lp) weight.

    Lp = round_up(n_latent, 128).  W_mu occupies columns [0, n_latent), W_lv
    occupies [Lp, Lp + n_latent); padding columns are zero (zero weight + zero
    bias => log_var = 0 => KL contribution 0).
    """
    w_mu, w_lv = params["w_mu"], params["w_lv"]
    b_mu, b_lv = params["b_mu"], params["b_lv"]
    n_hidden, n_latent = w_mu.shape
    lp = _round_up(n_latent, 128)
    p = 2 * lp
    w_cat = jnp.zeros((n_hidden, p), w_mu.dtype)
    w_cat = w_cat.at[:, :n_latent].set(w_mu)
    w_cat = w_cat.at[:, lp:lp + n_latent].set(w_lv)
    b_cat = jnp.zeros((1, p), jnp.float32)
    b_cat = b_cat.at[:, :n_latent].set(b_mu.reshape(1, n_latent))
    b_cat = b_cat.at[:, lp:lp + n_latent].set(b_lv.reshape(1, n_latent))
    return w_cat, b_cat


def latent_model_forward(h, w_cat, b_cat, n_latent, *, kl_weight,
                         training=True, eps=None, key=None,
                         block_b=512, matmul_dtype=None):
    """Returns (z, kl) in training mode, (z, None) in eval mode.

    eps: optional pre-drawn N(0,1) noise of shape (B, n_latent); drawn from
         `key` when None (mirrors torch.randn_like(sigma)).
    matmul_dtype=jnp.bfloat16 casts only the resident weight (f32 accumulation).
         h is intentionally NOT cast here (wrapper-side cast = extra HBM pass);
         feed bf16 h from the producer if you want a bf16 h stream.
    block_b: rows per grid step.  512-1024 suits v6e/v7x; use 128-256 on v5e.
    """
    B, n_hidden = h.shape
    P = w_cat.shape[1]
    Lp = P // 2
    assert n_latent <= Lp
    out_dtype = h.dtype

    if matmul_dtype is not None:
        w_cat = w_cat.astype(matmul_dtype)
    # b_cat stays f32 (added after f32 accumulation).

    narrow = (jnp.dtype(h.dtype).itemsize < 4
              or (matmul_dtype is not None
                  and jnp.dtype(matmul_dtype).itemsize < 4))
    row_align = 16 if narrow else 8
    tile_b = max(row_align,
                 min(_round_up(B, row_align), _round_up(block_b, row_align)))
    b_pad = _round_up(B, tile_b)
    if b_pad != B:
        h = jnp.pad(h, ((0, b_pad - B), (0, 0)))
    grid_n = b_pad // tile_b

    h_spec = pl.BlockSpec((tile_b, n_hidden), lambda i: (i, 0))
    z_spec = pl.BlockSpec((tile_b, Lp), lambda i: (i, 0))

    # VMEM budget: resident weight (single-buffered) + double-buffered streams.
    wb = jnp.dtype(w_cat.dtype).itemsize
    hb = jnp.dtype(h.dtype).itemsize
    ob = jnp.dtype(out_dtype).itemsize
    w_cols = P if training else Lp
    need = (n_hidden * w_cols * wb + w_cols * 4
            + 2 * tile_b * n_hidden * hb
            + 2 * tile_b * Lp * ob
            + ((2 * tile_b * Lp * 4 + 2 * Lp * 4) if training else 0))
    vmem_limit = int(min(64 << 20, max(need + (4 << 20), 16 << 20)))
    cp = pltpu.CompilerParams(dimension_semantics=("parallel",),
                              vmem_limit_bytes=vmem_limit)
    cost = pl.CostEstimate(
        flops=2 * b_pad * n_hidden * w_cols,
        transcendentals=(b_pad * Lp) if training else 0,
        bytes_accessed=(b_pad * n_hidden * hb + n_hidden * w_cols * wb
                        + b_pad * Lp * ob
                        + (b_pad * Lp * 4 if training else 0)))

    # TODO(synk): for very large n_hidden on v7x (resident weight >~ 8-12 MiB),
    # add a second "arbitrary" K grid axis + f32 VMEM accumulator instead of
    # keeping the whole (n_hidden, P) weight resident.

    if training:
        if eps is None:
            if key is None:
                raise ValueError("training mode needs `eps` or `key`")
            eps = jax.random.normal(key, (B, n_latent), dtype=jnp.float32)
        eps = eps.astype(jnp.float32)
        eps = jnp.pad(eps, ((0, b_pad - B), (0, Lp - n_latent)))
        kernel = functools.partial(_latent_train_kernel, lp=Lp,
                                   tile_b=tile_b, true_batch=B)
        z_pad, kl_lanes = pl.pallas_call(
            kernel,
            grid=(grid_n,),
            in_specs=[h_spec,
                      _resident_spec((n_hidden, P)),
                      _resident_spec((1, P)),
                      z_spec],                      # eps: same tiling as z
            out_specs=(z_spec, pl.BlockSpec((1, Lp), lambda i: (0, i))),
            out_shape=(jax.ShapeDtypeStruct((b_pad, Lp), out_dtype),
                       jax.ShapeDtypeStruct((1, grid_n * Lp), jnp.float32)),
            compiler_params=cp,
            cost_estimate=cost,
        )(h, w_cat, b_cat, eps)
        z = z_pad if (b_pad == B and Lp == n_latent) else z_pad[:B, :n_latent]
        kl = -0.5 * jnp.sum(kl_lanes) * jnp.float32(kl_weight)
        return z, kl

    # Eval: project only against the mu half of the fused weight.
    z_pad = pl.pallas_call(
        _latent_eval_kernel,
        grid=(grid_n,),
        in_specs=[h_spec,
                  _resident_spec((n_hidden, Lp)),
                  _resident_spec((1, Lp))],
        out_specs=z_spec,
        out_shape=jax.ShapeDtypeStruct((b_pad, Lp), out_dtype),
        compiler_params=cp,
        cost_estimate=cost,
    )(h, w_cat[:, :Lp], b_cat[:, :Lp])
    z = z_pad if (b_pad == B and Lp == n_latent) else z_pad[:B, :n_latent]
    return z, None


def kl_schedule_step(kl_weight, step_count, warmup_step):
    """Host-side replica of LatentModel.kl_schedule_step (Python state only)."""
    step_count += 1
    if step_count < warmup_step:
        kl_weight = 0.0
    else:
        kl_weight = kl_weight + (0.01 - 1e-06) / warmup_step
    return kl_weight, step_count


def init_params(key, n_hidden, n_latent):
    """Deterministic init matching nn.Linear shapes (weights stored transposed)."""
    k1, k2, k3, k4 = jax.random.split(key, 4)
    bound = 1.0 / jnp.sqrt(n_hidden)
    return {
        "w_mu": jax.random.uniform(k1, (n_hidden, n_latent), jnp.float32, -bound, bound),
        "b_mu": jax.random.uniform(k2, (1, n_latent), jnp.float32, -bound, bound),
        "w_lv": jax.random.uniform(k3, (n_hidden, n_latent), jnp.float32, -bound, bound),
        "b_lv": jax.random.uniform(k4, (1, n_latent), jnp.float32, -bound, bound),
    }


# --------------------------------------------------------------------------
# Demo / correctness checks
# --------------------------------------------------------------------------
if __name__ == "__main__":
    B, n_hidden, n_latent = 8, 32, 16
    kl_weight = 1e-06

    root = jax.random.PRNGKey(0)
    k_params, k_h, k_eps = jax.random.split(root, 3)

    params = init_params(k_params, n_hidden, n_latent)
    h = jax.random.normal(k_h, (B, n_hidden), dtype=jnp.float32)
    eps = jax.random.normal(k_eps, (B, n_latent), dtype=jnp.float32)
    w_cat, b_cat = fuse_latent_params(params)

    # --- training-mode forward (reparameterization + weighted KL) ---
    z, kl = latent_model_forward(h, w_cat, b_cat, n_latent,
                                 kl_weight=kl_weight, eps=eps, training=True)
    jax.block_until_ready(z)
    jax.block_until_ready(kl)

    mu_ref = h @ params["w_mu"] + params["b_mu"]
    lv_ref = h @ params["w_lv"] + params["b_lv"]
    sigma_ref = jnp.exp(0.5 * lv_ref)
    z_ref = mu_ref + sigma_ref * eps
    kl_ref = -0.5 * jnp.sum(1.0 + lv_ref - mu_ref ** 2 - jnp.exp(lv_ref)) * kl_weight

    assert z.shape == (B, n_latent)
    assert jnp.allclose(z, z_ref, atol=1e-4, rtol=1e-4), "train z mismatch"
    assert jnp.allclose(kl, kl_ref, rtol=2e-3, atol=1e-8), "kl mismatch"

    # Determinism for fixed eps.
    z2, _ = latent_model_forward(h, w_cat, b_cat, n_latent,
                                 kl_weight=kl_weight, eps=eps, training=True)
    assert jnp.allclose(z, z2), "non-deterministic for fixed eps"

    # --- eval-mode forward (mu-half-only projection, no KL/eps work) ---
    z_eval, kl_eval = latent_model_forward(h, w_cat, b_cat, n_latent,
                                           kl_weight=kl_weight, training=False)
    jax.block_until_ready(z_eval)
    assert kl_eval is None
    assert jnp.allclose(z_eval, mu_ref, atol=1e-4, rtol=1e-4), "eval z mismatch"

    print("KERNEL_OK")
</pallas_src>

<mosaic_0001>
module attributes {stable_mosaic.version = 11 : i64} {
  func.func @_latent_train_kernel(%arg0: i32, %arg1: memref<8x32xf32, #tpu.memory_space<vmem>>, %arg2: memref<32x256xf32, #tpu.memory_space<vmem>>, %arg3: memref<1x256xf32, #tpu.memory_space<vmem>>, %arg4: memref<8x128xf32, #tpu.memory_space<vmem>>, %arg5: memref<8x128xf32, #tpu.memory_space<vmem>>, %arg6: memref<1x128xf32, #tpu.memory_space<vmem>>) attributes {dimension_semantics = [#tpu.dimension_semantics<parallel>], iteration_bounds = array<i64: 1>, scalar_prefetch = 0 : i64, scratch_operands = 0 : i64, tpu.core_type = #tpu.core_type<tc>, window_params = [{transform_indices = @transform_0, window_bounds = array<i64: 8, 32>}, {pipeline_mode = #tpu.pipeline_mode<synchronous>, transform_indices = @transform_1, window_bounds = array<i64: 32, 256>}, {pipeline_mode = #tpu.pipeline_mode<synchronous>, transform_indices = @transform_2, window_bounds = array<i64: 1, 256>}, {transform_indices = @transform_3, window_bounds = array<i64: 8, 128>}, {transform_indices = @transform_4, window_bounds = array<i64: 8, 128>}, {transform_indices = @transform_5, window_bounds = array<i64: 1, 128>}]} {
    %c0 = arith.constant 0 : index
    %c0_0 = arith.constant 0 : index
    %0 = vector.load %arg1[%c0, %c0_0] : memref<8x32xf32, #tpu.memory_space<vmem>>, vector<8x32xf32>
    %c0_1 = arith.constant 0 : index
    %c0_2 = arith.constant 0 : index
    %1 = vector.load %arg2[%c0_1, %c0_2] : memref<32x256xf32, #tpu.memory_space<vmem>>, vector<32x256xf32>
    %cst = arith.constant dense<0.000000e+00> : vector<8x256xf32>
    %2 = tpu.matmul %0, %1, %cst {dimension_numbers = #tpu.dot_dimension_numbers<[1], [0], [0], [1], [0, 0, 1, 1], [], []>} : vector<8x32xf32>, vector<32x256xf32>, vector<8x256xf32> -> vector<8x256xf32>
    %c0_3 = arith.constant 0 : index
    %c0_4 = arith.constant 0 : index
    %3 = vector.load %arg3[%c0_3, %c0_4] : memref<1x256xf32, #tpu.memory_space<vmem>>, vector<1x256xf32>
    %4 = vector.broadcast %3 : vector<1x256xf32> to vector<8x256xf32>
    %5 = arith.addf %2, %4 : vector<8x256xf32>
    %6 = vector.extract_strided_slice %5 {offsets = [0, 0], sizes = [8, 128], strides = [1, 1]} : vector<8x256xf32> to vector<8x128xf32>
    %7 = vector.extract_strided_slice %5 {offsets = [0, 128], sizes = [8, 128], strides = [1, 1]} : vector<8x256xf32> to vector<8x128xf32>
    %cst_5 = arith.constant 5.000000e-01 : f32
    %8 = vector.broadcast %cst_5 : f32 to vector<8x128xf32>
    %9 = arith.mulf %8, %7 : vector<8x128xf32>
    %10 = math.exp %9 : vector<8x128xf32>
    %c0_6 = arith.constant 0 : index
    %c0_7 = arith.constant 0 : index
    %11 = vector.load %arg4[%c0_6, %c0_7] : memref<8x128xf32, #tpu.memory_space<vmem>>, vector<8x128xf32>
    %12 = arith.mulf %10, %11 : vector<8x128xf32>
    %13 = arith.addf %6, %12 : vector<8x128xf32>
    %c0_8 = arith.constant 0 : index
    %c0_9 = arith.constant 0 : index
    %14 = vector.load %arg5[%c0_8, %c0_9] : memref<8x128xf32, #tpu.memory_space<vmem>>, vector<8x128xf32>
    tpu.vector_store %arg5[%c0_8, %c0_9], %13 {strides = array<i32>} : memref<8x128xf32, #tpu.memory_space<vmem>>, vector<8x128xf32>,
    %cst_10 = arith.constant 1.000000e+00 : f32
    %15 = vector.broadcast %cst_10 : f32 to vector<8x128xf32>
    %16 = arith.addf %15, %7 : vector<8x128xf32>
    %17 = arith.mulf %6, %6 : vector<8x128xf32>
    %18 = arith.subf %16, %17 : vector<8x128xf32>
    %19 = arith.mulf %10, %10 : vector<8x128xf32>
    %20 = arith.subf %18, %19 : vector<8x128xf32>
    %cst_11 = arith.constant dense<0.000000e+00> : vector<128xf32>
    %21 = vector.multi_reduction <add>, %20, %cst_11 [0] : vector<8x128xf32> to vector<128xf32>
    %22 = vector.shape_cast %21 : vector<128xf32> to vector<1x128xf32>
    %c0_12 = arith.constant 0 : index
    %c0_13 = arith.constant 0 : index
    %23 = vector.load %arg6[%c0_12, %c0_13] : memref<1x128xf32, #tpu.memory_space<vmem>>, vector<1x128xf32>
    tpu.vector_store %arg6[%c0_12, %c0_13], %22 {strides = array<i32>} : memref<1x128xf32, #tpu.memory_space<vmem>>, vector<1x128xf32>,
    return
  }
  func.func @transform_0(%arg0: i32) -> (i32, i32) {
    %c0_i32 = arith.constant 0 : i32
    %c0_i32_0 = arith.constant 0 : i32
    return %arg0, %c0_i32 : i32, i32
  }
  func.func @transform_1(%arg0: i32) -> (i32, i32) {
    %c0_i32 = arith.constant 0 : i32
    %c0_i32_0 = arith.constant 0 : i32
    %c0_i32_1 = arith.constant 0 : i32
    return %c0_i32, %c0_i32_0 : i32, i32
  }
  func.func @transform_2(%arg0: i32) -> (i32, i32) {
    %c0_i32 = arith.constant 0 : i32
    %c0_i32_0 = arith.constant 0 : i32
    %c0_i32_1 = arith.constant 0 : i32
    return %c0_i32, %c0_i32_0 : i32, i32
  }
  func.func @transform_3(%arg0: i32) -> (i32, i32) {
    %c0_i32 = arith.constant 0 : i32
    %c0_i32_0 = arith.constant 0 : i32
    return %arg0, %c0_i32 : i32, i32
  }
  func.func @transform_4(%arg0: i32) -> (i32, i32) {
    %c0_i32 = arith.constant 0 : i32
    %c0_i32_0 = arith.constant 0 : i32
    return %arg0, %c0_i32 : i32, i32
  }
  func.func @transform_5(%arg0: i32) -> (i32, i32) {
    %c0_i32 = arith.constant 0 : i32
    %c0_i32_0 = arith.constant 0 : i32
    return %c0_i32, %arg0 : i32, i32
  }
}

</mosaic_0001>

<bundles_post_ra>
// kernel: tpu_custom_call.1
= control target key start
LH: loop header
LB: loop body
LE: loop exit
PB: predicated region body
PF: predicated region fallthrough
CT: control target
= control target key end

     0   :  { %11 = vsyncpa [#allocation3], 0  ;;  %s404_s0 = inlined_call_operand.hbm [shape: f32[8,32], index: 0, kind: input, shape index: {}]   ;;  %s405_s1 = inlined_call_operand.hbm [shape: f32[32,256], index: 1, kind: input, shape index: {}]   ;;  %s406_s2 = inlined_call_operand.vmem [shape: f32[1,256], index: 2, kind: input, shape index: {}]   ;;  %s407_s3 = inlined_call_operand.vmem [shape: f32[8,128], index: 3, kind: input, shape index: {}]   ;;  %s408_s4 = inlined_call_operand.hbm [shape: f32[8,128], index: 4, kind: output, shape index: {0}]   ;;  %s409_s5 = inlined_call_operand.hbm [shape: f32[1,128], index: 5, kind: output, shape index: {1}]  }
   0x1   :  { %12 = vsyncpa [#allocation6], 0 }
   0x2   :  { %13 = vsyncpa [#allocation4], 0 }
   0x3   :  { %14 = vsyncpa [#allocation9], 0  ;;  %s306_s18 = smov [#allocation2]   ;;  %s307_s20 = smov [#allocation5]  }
   0x4   :  { %s21_s19 = sshll.u32 %s306_s18, 4  ;;  %s30_s21 = sshll.u32 %s307_s20, 4  ;;  %s22_s19 = int_to_ptr.vmem [resolvable:$true] %s21_s19  ;;  %s343_s21 = int_to_ptr.vmem [resolvable:$true] %s30_s21 }
   0x5   :  { %s210_s24 = scalar_lea.hbm %s404_s0, 128 }
   0x6   :  { %p211_p0 = scmp.ne.s32.totalorder %s404_s0, %s210_s24  ;;  %p214_p1 = scmp.lt.u32.totalorder %s210_s24, %s404_s0 }
   0x8   :  { %p216_p2 = pnand %p214_p1, %p211_p0 }
   0xa   :  { %219 = shalt.err (!%p216_p2)
}
   0xb   :  { %s220_s29 = scalar_lea.vmem %s22_s19, 128  ;;  %p225_p4 = scmp.lt.s32.totalorder %s22_s19, %s22_s19 }
   0xc   :  { %p221_p3 = scmp.ne.s32.totalorder %s22_s19, %s220_s29  ;;  %p226_p5 = scmp.lt.s32.totalorder %s220_s29, %s220_s29 }
   0xe   :  { %p227_p6 = por %p226_p5, %p225_p4 }
  0x10   :  { %p228_p7 = pnand %p227_p6, %p221_p3 }
  0x12   :  { %231 = shalt.err (!%p228_p7)
}
  0x13   :  { %24 = dma.hbm_to_vmem [thread:$0]  %s404_s0, 128, %s22_s19, [#allocation3]  }
  0x14   :  { %s232_s9 = scalar_lea.hbm %s405_s1, 1024 }
  0x15   :  { %p233_p8 = scmp.ne.s32.totalorder %s405_s1, %s232_s9  ;;  %p236_p9 = scmp.lt.u32.totalorder %s232_s9, %s405_s1 }
  0x17   :  { %p238_p10 = pnand %p236_p9, %p233_p8 }
  0x19   :  { %241 = shalt.err (!%p238_p10)
}
  0x1a   :  { %s242_s14 = scalar_lea.vmem %s343_s21, 1024  ;;  %p247_p12 = scmp.lt.s32.totalorder %s343_s21, %s343_s21 }
  0x1b   :  { %p243_p11 = scmp.ne.s32.totalorder %s343_s21, %s242_s14  ;;  %p248_p13 = scmp.lt.s32.totalorder %s242_s14, %s242_s14 }
  0x1d   :  { %p249_p0 = por %p248_p13, %p247_p12 }
  0x1f   :  { %p250_p1 = pnand %p249_p0, %p243_p11 }
  0x21   :  { %253 = shalt.err (!%p250_p1)
}
  0x22   :  { %s308_s0 = smov 256   ;;  %s309_s15 = smov 16  }
  0x23   :  { %36 = dma.hbm_to_vmem [thread:$0]  %s405_s1, 1024, %s343_s21, [#allocation6], %s308_s0, %s308_s0, %s309_s15  }
  0x24   :  { %298 = dma.done.wait [#allocation3], 128  }
  0x25   :  { %299 = vsyncadd [#allocation3], 4294967168 }
  0x26   :  { %300 = dma.done.wait [#allocation6], 1024  }
  0x27   :  { %301 = vsyncadd [#allocation6], 4294966272  ;;  %v310_v0 = vmov 0.0   ;;  %v49_v1 = vld [vmem:[#allocation5 + $0x8] sm:$0xff]  ;;  %v51_v2 = vld [vmem:[#allocation5 + $0x18] sm:$0xff]  ;;  %vm68_vm0 = vcmask 261120   ;;  %v58_v14 = vlaneseq }
  0x28   :  { %136 = vmatprep.mubr.f32.mxu0 %v310_v0  ;;  %v48_v3 = vld [vmem:[#allocation5] sm:$0xff]  ;;  %v193_v4 = vpack.c.bf16 %v51_v2, %v49_v1  ;;  %v50_v5 = vld [vmem:[#allocation5 + $0x10] sm:$0xff]  ;;  %v53_v6 = vld [vmem:[#allocation5 + $0x28] sm:$0xff]  ;;  %s311_s21 = smov [#allocation7]  }
  0x29   :  { %v55_v7 = vld [vmem:[#allocation5 + $0x38] sm:$0xff]  ;;  %v195_v8 = vpack.c.bf16 %v50_v5, %v48_v3  ;;  %v52_v10 = vld [vmem:[#allocation5 + $0x20] sm:$0xff]  ;;  %v54_v11 = vld [vmem:[#allocation5 + $0x30] sm:$0xff]  ;;  %v59_v15 = vshrl.u32 %v58_v14, 7 }
  0x2a   :  { %v197_v9 = vpack.c.bf16 %v55_v7, %v53_v6  ;;  %194 = vmatprep.subr.bf16.mxu0 %v193_v4  ;;  %v199_v12 = vpack.c.bf16 %v54_v11, %v52_v10  ;;  %v47_v13 = vld [vmem:[#allocation2] sm:$0xff] }
  0x2b   :  { %196 = vmatpush1.bf16.msra.mxu0 %v195_v8  ;;  %v60_v16 = vsub.s32 0, %v59_v15  ;;  %v56_v17 = vld [vmem:[%s406_s2] sm:$0x3]  ;;  %v64_v18 = vsub.s32 1, %v59_v15  ;;  %s168_s2 = sshll.u32 %s311_s21, 4  ;;  %s169_s2 = int_to_ptr.vmem [resolvable:$true] %s168_s2 }
  0x2c   :  { %198 = vmatprep.subr.bf16.mxu0 %v197_v9  ;;  %v146_v30 = vld [vmem:[%s407_s3] sm:$0xff]  ;;  %s254_s22 = scalar_lea.vmem %s169_s2, 128  ;;  %p259_p3 = scmp.lt.s32.totalorder %s169_s2, %s169_s2 }
  0x2d   :  { %v61_v19 = vrot.slane %v56_v17, %v60_v16  ;;  %v65_v20 = vrot.slane %v56_v17, %v64_v18  ;;  %p255_p2 = scmp.ne.s32.totalorder %s169_s2, %s254_s22  ;;  %p260_p4 = scmp.lt.s32.totalorder %s254_s22, %s254_s22 }
  0x2f   :  { %200 = vmatpush1.bf16.msra.mxu0 %v199_v12  ;;  %p261_p5 = por %p260_p4, %p259_p3 }
  0x31   :  { %p262_p6 = pnand %p261_p5, %p255_p2 }
  0x32   :  { %192 = vmatmul.mubr.msk.f32.vlgmr.msra.gmra.mrb[0].mxu0 %vm68_vm0, %v47_v13 }
 0x105   :  { %v138_v21 = vpop.f32.mrb[0].mxu0 }
 0x106   :  { %v139_v22 = vadd.f32 %v138_v21, %v61_v19  ;;  %v140_v23 = vpop.f32.mrb[1].mxu0 }
 0x107   :  { %v141_v24 = vadd.f32 %v140_v23, %v65_v20 }
 0x108   :  { %v151_v25 = vmul.f32 %v139_v22, %v139_v22 }
 0x109   :  { %v143_v26 = vmul.f32 0.5, %v141_v24  ;;  %v150_v27 = vadd.f32 1.0, %v141_v24 }
 0x10b   :  { %v144_v28 = vmul.f32 1.442695, %v143_v26  ;;  %v152_v29 = vsub.f32 %v150_v27, %v151_v25 }
 0x10d   :  { %208 = vpow2.f32 %v144_v28 }
 0x117   :  { %v209_v31 = vpop.eup %208 }
 0x118   :  { %v153_v32 = vmul.f32 %v209_v31, %v209_v31  ;;  %v147_v33 = vmul.f32 %v209_v31, %v146_v30 }
 0x11a   :  { %v154_v34 = vsub.f32 %v152_v29, %v153_v32  ;;  %v148_v35 = vadd.f32 %v147_v33, %v139_v22 }
 0x11c   :  { %v155_v36 = vrot.slane %v154_v34, 4  ;;  %149 = vst [vmem:[#allocation7] sm:$0xff] %v148_v35 }
 0x11d   :  { %265 = shalt.err (!%p262_p6)
}
 0x11e   :  { %s266_s3 = scalar_lea.hbm %s408_s4, 128 }
 0x11f   :  { %p267_p7 = scmp.ne.s32.totalorder %s408_s4, %s266_s3  ;;  %p270_p8 = scmp.lt.u32.totalorder %s266_s3, %s408_s4 }
 0x121   :  { %p272_p9 = pnand %p270_p8, %p267_p7 }
 0x123   :  { %275 = shalt.err (!%p272_p9)
}
 0x124   :  { %171 = dma.vmem_to_hbm [thread:$0]  %s169_s2, 128, %s408_s4, [#allocation4]   ;;  %v156_v37 = vadd.f32 %v155_v36, %v154_v34 }
 0x125   :  { %s312_s6 = smov [#allocation8]  }
 0x126   :  { %v157_v38 = vrot.slane %v156_v37, 2  ;;  %s178_s7 = sshll.u32 %s312_s6, 4  ;;  %s179_s7 = int_to_ptr.vmem [resolvable:$true] %s178_s7 }
 0x127   :  { %s276_s8 = scalar_lea.vmem %s179_s7, 16  ;;  %s280_s9 = scalar_lea.vmem %s179_s7, 32 }
 0x128   :  { %v158_v39 = vadd.f32 %v157_v38, %v156_v37  ;;  %p277_p10 = scmp.ne.s32.totalorder %s179_s7, %s276_s8  ;;  %p281_p11 = scmp.lt.s32.totalorder %s179_s7, %s179_s7 }
 0x129   :  { %p282_p12 = scmp.lt.s32.totalorder %s280_s9, %s276_s8 }
 0x12a   :  { %v159_v40 = vrot.slane %v158_v39, 1 }
 0x12b   :  { %p283_p13 = por %p282_p12, %p281_p11 }
 0x12c   :  { %v160_v41 = vadd.f32 %v159_v40, %v158_v39 }
 0x12d   :  { %p284_p0 = pnand %p283_p13, %p277_p10 }
 0x12e   :  { %161 = vst [vmem:[#allocation8] sm:$0x1] %v160_v41 }
 0x12f   :  { %287 = shalt.err (!%p284_p0)
}
 0x130   :  { %s288_s4 = scalar_lea.hbm %s409_s5, 16 }
 0x131   :  { %p289_p1 = scmp.ne.s32.totalorder %s409_s5, %s288_s4  ;;  %p292_p2 = scmp.lt.u32.totalorder %s288_s4, %s409_s5 }
 0x133   :  { %p294_p3 = pnand %p292_p2, %p289_p1 }
 0x135   :  { %297 = shalt.err (!%p294_p3)
}
 0x136   :  { %181 = dma.vmem_to_hbm [thread:$0]  %s179_s7, 16, %s409_s5, [#allocation9]  }
 0x137   :  { %302 = dma.done.wait [#allocation4], 128  }
 0x138   :  { %303 = vsyncadd [#allocation4], 4294967168 }
 0x139   :  { %304 = dma.done.wait [#allocation9], 16  }
 0x13a   :  { %305 = vsyncadd [#allocation9], 4294967280 }
 0x13b   :  { %188 = vsyncpa [#allocation3], 1 }
 0x13c   :  { %189 = vsyncpa [#allocation6], 1 }
 0x13d   :  { %190 = vsyncpa [#allocation4], 1 }
 0x13e   :  { %191 = vsyncpa [#allocation9], 1 }

</bundles_post_ra>
